<compile_context>
chip_gen: v6e
topology: v6e:2x2x1
jax: 0.10.0
libtpu: 0.0.40
codegen_flags: <defaults>
</compile_context>

<pallas_src>
import functools

import jax
import jax.numpy as jnp
from jax.experimental import pallas as pl
from jax.experimental.pallas import tpu as pltpu

NEG_SLOPE = 0.01  # PyTorch nn.LeakyReLU default

IN_F, HID, OUT = 784, 200, 10          # logical sizes (PyTorch module)
IN_P, HID_P, OUT_P = 896, 256, 128     # lane-aligned padded sizes (x128)


def _leaky_relu(x):
    return jnp.where(x > 0, x, NEG_SLOPE * x)


def mlp_kernel(x_ref, w1_ref, b1_ref, w2_ref, b2_ref, w3_ref, b3_ref, o_ref):
    # x tile: (TB, IN_P) bf16; weights bf16, resident across the batch grid.
    # MXU accumulates in f32; biases added in f32.
    h1 = jnp.dot(x_ref[...], w1_ref[...], preferred_element_type=jnp.float32)
    h1 = _leaky_relu(h1 + b1_ref[...]).astype(jnp.bfloat16)

    h2 = jnp.dot(h1, w2_ref[...], preferred_element_type=jnp.float32)
    h2 = _leaky_relu(h2 + b2_ref[...]).astype(jnp.bfloat16)

    h3 = jnp.dot(h2, w3_ref[...], preferred_element_type=jnp.float32)
    h3 = _leaky_relu(h3 + b3_ref[...])

    o_ref[...] = h3.astype(o_ref.dtype)


def _round_up(n, m):
    return (n + m - 1) // m * m


def _pad_to(a, shape):
    return jnp.pad(a, [(0, t - s) for s, t in zip(a.shape, shape)])


def prepare_params(params):
    """One-time: zero-pad to lane-aligned shapes, cast weights to bf16."""
    w1 = _pad_to(params["w1"], (IN_P, HID_P)).astype(jnp.bfloat16)
    b1 = _pad_to(params["b1"], (1, HID_P)).astype(jnp.float32)
    w2 = _pad_to(params["w2"], (HID_P, HID_P)).astype(jnp.bfloat16)
    b2 = _pad_to(params["b2"], (1, HID_P)).astype(jnp.float32)
    w3 = _pad_to(params["w3"], (HID_P, OUT_P)).astype(jnp.bfloat16)
    b3 = _pad_to(params["b3"], (1, OUT_P)).astype(jnp.float32)
    return (w1, b1, w2, b2, w3, b3)


@functools.partial(jax.jit, static_argnames=("tb",))
def mynet_forward(x, prepared, *, tb=512):
    """x: (B, 784) float32. prepared: output of prepare_params(). Returns (B, 10) f32.

    tb: batch tile.  512 is a safe default everywhere; sweep larger
    (1024-4096) on v5e/v6e where VMEM is 128 MiB.
    """
    w1, b1, w2, b2, w3, b3 = prepared
    B = x.shape[0]

    tb = _round_up(min(tb, _round_up(B, 8)), 8)   # clamp tile for tiny batches
    b_pad = _round_up(B, tb)

    xp = _pad_to(x, (b_pad, IN_P)).astype(jnp.bfloat16)

    resident = lambda shape: pl.BlockSpec(shape, lambda i, _s=shape: (0,) * len(_s))

    out = pl.pallas_call(
        mlp_kernel,
        out_shape=jax.ShapeDtypeStruct((b_pad, OUT_P), jnp.float32),
        grid=(pl.cdiv(b_pad, tb),),
        in_specs=[
            pl.BlockSpec((tb, IN_P), lambda i: (i, 0)),   # streamed x tiles
            resident(w1.shape), resident(b1.shape),       # resident weights
            resident(w2.shape), resident(b2.shape),
            resident(w3.shape), resident(b3.shape),
        ],
        out_specs=pl.BlockSpec((tb, OUT_P), lambda i: (i, 0)),
        compiler_params=pltpu.CompilerParams(
            dimension_semantics=("parallel",),            # megacore-shardable
        ),
    )(xp, w1, b1, w2, b2, w3, b3)

    return out[:B, :OUT]


def init_params(key):
    """Deterministic init matching the PyTorch module's layer shapes (f32)."""
    ks = jax.random.split(key, 6)

    def linear(kw, kb, fan_in, fan_out):
        bound = 1.0 / jnp.sqrt(fan_in)
        w = jax.random.uniform(kw, (fan_in, fan_out), jnp.float32, -bound, bound)
        b = jax.random.uniform(kb, (1, fan_out), jnp.float32, -bound, bound)
        return w, b

    w1, b1 = linear(ks[0], ks[1], IN_F, HID)
    w2, b2 = linear(ks[2], ks[3], HID, HID)
    w3, b3 = linear(ks[4], ks[5], HID, OUT)
    return {"w1": w1, "b1": b1, "w2": w2, "b2": b2, "w3": w3, "b3": b3}


def reference_forward(x, p):
    h = x @ p["w1"] + p["b1"]
    h = jnp.where(h > 0, h, NEG_SLOPE * h)
    h = h @ p["w2"] + p["b2"]
    h = jnp.where(h > 0, h, NEG_SLOPE * h)
    h = h @ p["w3"] + p["b3"]
    return jnp.where(h > 0, h, NEG_SLOPE * h)


if __name__ == "__main__":
    key = jax.random.PRNGKey(0)
    kp, kx = jax.random.split(key)
    params = init_params(kp)
    prepared = prepare_params(params)

    B = 200  # non-multiple of the tile: exercises batch padding + 4 grid steps
    x = jax.random.normal(kx, (B, IN_F), jnp.float32)

    out = mynet_forward(x, prepared, tb=64)
    out = jax.block_until_ready(out)

    ref = reference_forward(x, params)  # f32 reference (PyTorch-equivalent)
    assert out.shape == (B, OUT), out.shape
    # bf16 weights/activations drift slightly from the f32 reference.
    assert jnp.allclose(out, ref, atol=5e-2, rtol=5e-2), "mismatch vs reference"

    print("KERNEL_OK")
</pallas_src>

<mosaic_0001>
module attributes {stable_mosaic.version = 11 : i64} {
  func.func @mlp_kernel(%arg0: i32, %arg1: memref<64x896xbf16, #tpu.memory_space<vmem>>, %arg2: memref<896x256xbf16, #tpu.memory_space<vmem>>, %arg3: memref<1x256xf32, #tpu.memory_space<vmem>>, %arg4: memref<256x256xbf16, #tpu.memory_space<vmem>>, %arg5: memref<1x256xf32, #tpu.memory_space<vmem>>, %arg6: memref<256x128xbf16, #tpu.memory_space<vmem>>, %arg7: memref<1x128xf32, #tpu.memory_space<vmem>>, %arg8: memref<64x128xf32, #tpu.memory_space<vmem>>) attributes {dimension_semantics = [#tpu.dimension_semantics<parallel>], iteration_bounds = array<i64: 4>, scalar_prefetch = 0 : i64, scratch_operands = 0 : i64, tpu.core_type = #tpu.core_type<tc>, window_params = [{transform_indices = @transform_0, window_bounds = array<i64: 64, 896>}, {pipeline_mode = #tpu.pipeline_mode<synchronous>, transform_indices = @transform_1, window_bounds = array<i64: 896, 256>}, {pipeline_mode = #tpu.pipeline_mode<synchronous>, transform_indices = @transform_2, window_bounds = array<i64: 1, 256>}, {pipeline_mode = #tpu.pipeline_mode<synchronous>, transform_indices = @transform_3, window_bounds = array<i64: 256, 256>}, {pipeline_mode = #tpu.pipeline_mode<synchronous>, transform_indices = @transform_4, window_bounds = array<i64: 1, 256>}, {pipeline_mode = #tpu.pipeline_mode<synchronous>, transform_indices = @transform_5, window_bounds = array<i64: 256, 128>}, {pipeline_mode = #tpu.pipeline_mode<synchronous>, transform_indices = @transform_6, window_bounds = array<i64: 1, 128>}, {transform_indices = @transform_7, window_bounds = array<i64: 64, 128>}]} {
    %c0 = arith.constant 0 : index
    %c0_0 = arith.constant 0 : index
    %0 = vector.load %arg1[%c0, %c0_0] : memref<64x896xbf16, #tpu.memory_space<vmem>>, vector<64x896xbf16>
    %c0_1 = arith.constant 0 : index
    %c0_2 = arith.constant 0 : index
    %1 = vector.load %arg2[%c0_1, %c0_2] : memref<896x256xbf16, #tpu.memory_space<vmem>>, vector<896x256xbf16>
    %cst = arith.constant dense<0.000000e+00> : vector<64x256xf32>
    %2 = tpu.matmul %0, %1, %cst {dimension_numbers = #tpu.dot_dimension_numbers<[1], [0], [0], [1], [0, 0, 1, 1], [], []>} : vector<64x896xbf16>, vector<896x256xbf16>, vector<64x256xf32> -> vector<64x256xf32>
    %c0_3 = arith.constant 0 : index
    %c0_4 = arith.constant 0 : index
    %3 = vector.load %arg3[%c0_3, %c0_4] : memref<1x256xf32, #tpu.memory_space<vmem>>, vector<1x256xf32>
    %4 = vector.broadcast %3 : vector<1x256xf32> to vector<64x256xf32>
    %5 = arith.addf %2, %4 : vector<64x256xf32>
    %cst_5 = arith.constant 0.000000e+00 : f32
    %6 = vector.broadcast %cst_5 : f32 to vector<64x256xf32>
    %7 = arith.cmpf ogt, %5, %6 : vector<64x256xf32>
    %cst_6 = arith.constant 0.00999999977 : f32
    %8 = vector.broadcast %cst_6 : f32 to vector<64x256xf32>
    %9 = arith.mulf %8, %5 : vector<64x256xf32>
    %10 = arith.select %7, %5, %9 : vector<64x256xi1>, vector<64x256xf32>
    %11 = arith.truncf %10 : vector<64x256xf32> to vector<64x256xbf16>
    %c0_7 = arith.constant 0 : index
    %c0_8 = arith.constant 0 : index
    %12 = vector.load %arg4[%c0_7, %c0_8] : memref<256x256xbf16, #tpu.memory_space<vmem>>, vector<256x256xbf16>
    %cst_9 = arith.constant dense<0.000000e+00> : vector<64x256xf32>
    %13 = tpu.matmul %11, %12, %cst_9 {dimension_numbers = #tpu.dot_dimension_numbers<[1], [0], [0], [1], [0, 0, 1, 1], [], []>} : vector<64x256xbf16>, vector<256x256xbf16>, vector<64x256xf32> -> vector<64x256xf32>
    %c0_10 = arith.constant 0 : index
    %c0_11 = arith.constant 0 : index
    %14 = vector.load %arg5[%c0_10, %c0_11] : memref<1x256xf32, #tpu.memory_space<vmem>>, vector<1x256xf32>
    %15 = vector.broadcast %14 : vector<1x256xf32> to vector<64x256xf32>
    %16 = arith.addf %13, %15 : vector<64x256xf32>
    %cst_12 = arith.constant 0.000000e+00 : f32
    %17 = vector.broadcast %cst_12 : f32 to vector<64x256xf32>
    %18 = arith.cmpf ogt, %16, %17 : vector<64x256xf32>
    %cst_13 = arith.constant 0.00999999977 : f32
    %19 = vector.broadcast %cst_13 : f32 to vector<64x256xf32>
    %20 = arith.mulf %19, %16 : vector<64x256xf32>
    %21 = arith.select %18, %16, %20 : vector<64x256xi1>, vector<64x256xf32>
    %22 = arith.truncf %21 : vector<64x256xf32> to vector<64x256xbf16>
    %c0_14 = arith.constant 0 : index
    %c0_15 = arith.constant 0 : index
    %23 = vector.load %arg6[%c0_14, %c0_15] : memref<256x128xbf16, #tpu.memory_space<vmem>>, vector<256x128xbf16>
    %cst_16 = arith.constant dense<0.000000e+00> : vector<64x128xf32>
    %24 = tpu.matmul %22, %23, %cst_16 {dimension_numbers = #tpu.dot_dimension_numbers<[1], [0], [0], [1], [0, 0, 1, 1], [], []>} : vector<64x256xbf16>, vector<256x128xbf16>, vector<64x128xf32> -> vector<64x128xf32>
    %c0_17 = arith.constant 0 : index
    %c0_18 = arith.constant 0 : index
    %25 = vector.load %arg7[%c0_17, %c0_18] : memref<1x128xf32, #tpu.memory_space<vmem>>, vector<1x128xf32>
    %26 = vector.broadcast %25 : vector<1x128xf32> to vector<64x128xf32>
    %27 = arith.addf %24, %26 : vector<64x128xf32>
    %cst_19 = arith.constant 0.000000e+00 : f32
    %28 = vector.broadcast %cst_19 : f32 to vector<64x128xf32>
    %29 = arith.cmpf ogt, %27, %28 : vector<64x128xf32>
    %cst_20 = arith.constant 0.00999999977 : f32
    %30 = vector.broadcast %cst_20 : f32 to vector<64x128xf32>
    %31 = arith.mulf %30, %27 : vector<64x128xf32>
    %32 = arith.select %29, %27, %31 : vector<64x128xi1>, vector<64x128xf32>
    %c0_21 = arith.constant 0 : index
    %c0_22 = arith.constant 0 : index
    %33 = vector.load %arg8[%c0_21, %c0_22] : memref<64x128xf32, #tpu.memory_space<vmem>>, vector<64x128xf32>
    tpu.vector_store %arg8[%c0_21, %c0_22], %32 {strides = array<i32>} : memref<64x128xf32, #tpu.memory_space<vmem>>, vector<64x128xf32>,
    return
  }
  func.func @transform_0(%arg0: i32) -> (i32, i32) {
    %c0_i32 = arith.constant 0 : i32
    %c0_i32_0 = arith.constant 0 : i32
    return %arg0, %c0_i32 : i32, i32
  }
  func.func @transform_1(%arg0: i32) -> (i32, i32) {
    %c0_i32 = arith.constant 0 : i32
    %c0_i32_0 = arith.constant 0 : i32
    %c0_i32_1 = arith.constant 0 : i32
    return %c0_i32, %c0_i32_0 : i32, i32
  }
  func.func @transform_2(%arg0: i32) -> (i32, i32) {
    %c0_i32 = arith.constant 0 : i32
    %c0_i32_0 = arith.constant 0 : i32
    %c0_i32_1 = arith.constant 0 : i32
    return %c0_i32, %c0_i32_0 : i32, i32
  }
  func.func @transform_3(%arg0: i32) -> (i32, i32) {
    %c0_i32 = arith.constant 0 : i32
    %c0_i32_0 = arith.constant 0 : i32
    %c0_i32_1 = arith.constant 0 : i32
    return %c0_i32, %c0_i32_0 : i32, i32
  }
  func.func @transform_4(%arg0: i32) -> (i32, i32) {
    %c0_i32 = arith.constant 0 : i32
    %c0_i32_0 = arith.constant 0 : i32
    %c0_i32_1 = arith.constant 0 : i32
    return %c0_i32, %c0_i32_0 : i32, i32
  }
  func.func @transform_5(%arg0: i32) -> (i32, i32) {
    %c0_i32 = arith.constant 0 : i32
    %c0_i32_0 = arith.constant 0 : i32
    %c0_i32_1 = arith.constant 0 : i32
    return %c0_i32, %c0_i32_0 : i32, i32
  }
  func.func @transform_6(%arg0: i32) -> (i32, i32) {
    %c0_i32 = arith.constant 0 : i32
    %c0_i32_0 = arith.constant 0 : i32
    %c0_i32_1 = arith.constant 0 : i32
    return %c0_i32, %c0_i32_0 : i32, i32
  }
  func.func @transform_7(%arg0: i32) -> (i32, i32) {
    %c0_i32 = arith.constant 0 : i32
    %c0_i32_0 = arith.constant 0 : i32
    return %arg0, %c0_i32 : i32, i32
  }
}

</mosaic_0001>

<bundles_post_ra>
// kernel: mynet_forward.1
= control target key start
LH: loop header
LB: loop body
LE: loop exit
PB: predicated region body
PF: predicated region fallthrough
CT: control target
= control target key end

     0   :  { %s2686_s24 = smov 0   ;;  %s3357_s0 = inlined_call_operand.vmem [shape: bf16[256,896], index: 0, kind: input, shape index: {}]   ;;  %s3358_s1 = inlined_call_operand.vmem [shape: bf16[896,256], index: 1, kind: input, shape index: {}]   ;;  %s3359_s2 = inlined_call_operand.vmem [shape: f32[1,256], index: 2, kind: input, shape index: {}]   ;;  %s3360_s3 = inlined_call_operand.vmem [shape: bf16[256,256], index: 3, kind: input, shape index: {}]   ;;  %s3361_s4 = inlined_call_operand.vmem [shape: f32[1,256], index: 4, kind: input, shape index: {}]   ;;  %s3362_s5 = inlined_call_operand.vmem [shape: bf16[256,128], index: 5, kind: input, shape index: {}]   ;;  %s3363_s6 = inlined_call_operand.vmem [shape: f32[1,128], index: 6, kind: input, shape index: {}]   ;;  %s3364_s7 = inlined_call_operand.vmem [shape: f32[256,128], index: 7, kind: output, shape index: {}]  }
   0x1 LB: > { %s2115_s25 = sadd.s32 4294967295, %s2643_s24   ;;  %p2119_p0 = scmp.ge.s32.totalorder %s2643_s24, 1  ;;  %s2643_s24 = sphi %s2686_s24, %s17_s24  }
   0x2   : > { %p239_p1 = scmp.lt.s32.totalorder %s2643_s24, 5 }
   0x4   : > { %p240_p2 = pnand %p2119_p0, %p239_p1 }
   0x5   : > { %s2120_s19 = sshll.u32 (!%p240_p2), %s2115_s25, 3 }
   0x6   : > { %243 = sbr.rel (%p240_p2) target bundleno = 787 (0x313), region = 48  ;;  %p273_p3 = scmp.lt.s32.totalorder (!%p240_p2), %s2120_s19, 31 }
   0xb   : > { %v2365_v0 = vld [vmem:[%s3358_s1 + $0x74] ss:$8 sps:$4 sm:$0xff]   ;;  %v2367_v1 = vld [vmem:[%s3358_s1 + $0x70] ss:$8 sps:$4 sm:$0xff]   ;;  %v2371_v4 = vld [vmem:[%s3358_s1 + $0x64] ss:$8 sps:$4 sm:$0xff]  }
   0xc   : > { %1146 = vmatprep.subr.bf16.mxu0 %v2365_v0  ;;  %v2368_v2 = vld [vmem:[%s3358_s1 + $0x174] ss:$8 sps:$4 sm:$0xff]   ;;  %v2370_v3 = vld [vmem:[%s3358_s1 + $0x170] ss:$8 sps:$4 sm:$0xff]   ;;  %v2373_v5 = vld [vmem:[%s3358_s1 + $0x60] ss:$8 sps:$4 sm:$0xff]  }
   0xd   : > { %1147 = vmatpush1.bf16.msra.mxu0 %v2367_v1  ;;  %1219 = vmatprep.subr.bf16.mxu1 %v2368_v2  ;;  %v2374_v6 = vld [vmem:[%s3358_s1 + $0x164] ss:$8 sps:$4 sm:$0xff]   ;;  %v2376_v7 = vld [vmem:[%s3358_s1 + $0x160] ss:$8 sps:$4 sm:$0xff]   ;;  %v2377_v8 = vld [vmem:[%s3358_s1 + $0x54] ss:$8 sps:$4 sm:$0xff]  }
   0xe   : > { %1220 = vmatpush1.bf16.msra.mxu1 %v2370_v3  ;;  %1148 = vmatprep.subr.bf16.mxu0 %v2371_v4  ;;  %v2379_v9 = vld [vmem:[%s3358_s1 + $0x50] ss:$8 sps:$4 sm:$0xff]   ;;  %v2380_v10 = vld [vmem:[%s3358_s1 + $0x154] ss:$8 sps:$4 sm:$0xff]   ;;  %v2383_v11 = vld [vmem:[%s3358_s1 + $0x44] ss:$8 sps:$4 sm:$0xff]  }
   0xf   : > { %1221 = vmatprep.subr.bf16.mxu1 %v2374_v6  ;;  %v2382_v12 = vld [vmem:[%s3358_s1 + $0x150] ss:$8 sps:$4 sm:$0xff]   ;;  %v2386_v13 = vld [vmem:[%s3358_s1 + $0x144] ss:$8 sps:$4 sm:$0xff]   ;;  %v2385_v14 = vld [vmem:[%s3358_s1 + $0x40] ss:$8 sps:$4 sm:$0xff]  }
  0x10   : > { %v2389_v15 = vld [vmem:[%s3358_s1 + $0x34] ss:$8 sps:$4 sm:$0xff]   ;;  %v2388_v16 = vld [vmem:[%s3358_s1 + $0x140] ss:$8 sps:$4 sm:$0xff]   ;;  %v2391_v18 = vld [vmem:[%s3358_s1 + $0x30] ss:$8 sps:$4 sm:$0xff]  }
  0x11   : > { %1149 = vmatpush1.bf16.msra.mxu0 %v2373_v5  ;;  %v2392_v17 = vld [vmem:[%s3358_s1 + $0x134] ss:$8 sps:$4 sm:$0xff]   ;;  %v2395_v19 = vld [vmem:[%s3358_s1 + $0x24] ss:$8 sps:$4 sm:$0xff]   ;;  %v2394_v20 = vld [vmem:[%s3358_s1 + $0x130] ss:$8 sps:$4 sm:$0xff]  }
  0x12   : > { %1150 = vmatprep.subr.bf16.mxu0 %v2377_v8  ;;  %1222 = vmatpush1.bf16.msra.mxu1 %v2376_v7  ;;  %v2398_v21 = vld [vmem:[%s3358_s1 + $0x124] ss:$8 sps:$4 sm:$0xff]   ;;  %v2397_v22 = vld [vmem:[%s3358_s1 + $0x20] ss:$8 sps:$4 sm:$0xff]   ;;  %v2401_v23 = vld [vmem:[%s3358_s1 + $0x14] ss:$8 sps:$4 sm:$0xff]  }
  0x13   : > { %1223 = vmatprep.subr.bf16.mxu1 %v2380_v10  ;;  %v2400_v24 = vld [vmem:[%s3358_s1 + $0x120] ss:$8 sps:$4 sm:$0xff]   ;;  %v2404_v25 = vld [vmem:[%s3358_s1 + $0x114] ss:$8 sps:$4 sm:$0xff]   ;;  %v2403_v26 = vld [vmem:[%s3358_s1 + $0x10] ss:$8 sps:$4 sm:$0xff]  }
  0x14   : > { %v2407_v27 = vld [vmem:[%s3358_s1 + $0x4] ss:$8 sps:$4 sm:$0xff]   ;;  %v2406_v28 = vld [vmem:[%s3358_s1 + $0x110] ss:$8 sps:$4 sm:$0xff]   ;;  %v2409_v30 = vld [vmem:[%s3358_s1] ss:$8 sps:$4 sm:$0xff]  }
  0x15   : > { %1151 = vmatpush1.bf16.msra.mxu0 %v2379_v9  ;;  %v2410_v29 = vld [vmem:[%s3358_s1 + $0x104] ss:$8 sps:$4 sm:$0xff]   ;;  %v2413_v31 = vld [vmem:[%s3358_s1 + $0xf4] ss:$8 sps:$4 sm:$0xff]   ;;  %v2412_v32 = vld [vmem:[%s3358_s1 + $0x100] ss:$8 sps:$4 sm:$0xff]  }
  0x16   : > { %1152 = vmatprep.subr.bf16.mxu0 %v2383_v11  ;;  %1224 = vmatpush1.bf16.msra.mxu1 %v2382_v12  ;;  %v2416_v33 = vld [vmem:[%s3358_s1 + $0x1f4] ss:$8 sps:$4 sm:$0xff]   ;;  %v2415_v34 = vld [vmem:[%s3358_s1 + $0xf0] ss:$8 sps:$4 sm:$0xff]   ;;  %v2419_v35 = vld [vmem:[%s3358_s1 + $0xe4] ss:$8 sps:$4 sm:$0xff]  }
  0x17   : > { %1225 = vmatprep.subr.bf16.mxu1 %v2386_v13  ;;  %s3366_s19 = smov (!%p273_p3, %s2120_s19), 31  ;;  %v2418_v36 = vld [vmem:[%s3358_s1 + $0x1f0] ss:$8 sps:$4 sm:$0xff]   ;;  %v2422_v37 = vld [vmem:[%s3358_s1 + $0x1e4] ss:$8 sps:$4 sm:$0xff]  }
  0x18   : > { %v2421_v38 = vld [vmem:[%s3358_s1 + $0xe0] ss:$8 sps:$4 sm:$0xff]   ;;  %v2425_v39 = vld [vmem:[%s3358_s1 + $0xd4] ss:$8 sps:$4 sm:$0xff]   ;;  %s2355_s21 = smul.u32 28, %s3366_s19  ;;  %s2123_s28 = sshll.u32 %s3366_s19, 3 }
  0x19   : > { %1153 = vmatpush1.bf16.msra.mxu0 %v2385_v14  ;;  %v2424_v40 = vld [vmem:[%s3358_s1 + $0x1e0] ss:$8 sps:$4 sm:$0xff]   ;;  %v2428_v41 = vld [vmem:[%s3358_s1 + $0x1d4] ss:$8 sps:$4 sm:$0xff]   ;;  %v2427_v42 = vld [vmem:[%s3358_s1 + $0xd0] ss:$8 sps:$4 sm:$0xff]   ;;  %s3344_s30 = scalar_lea.vmem %s3364_s7, %s2123_s28 }
  0x1a   : > { %1154 = vmatprep.subr.bf16.mxu0 %v2389_v15  ;;  %1226 = vmatpush1.bf16.msra.mxu1 %v2388_v16  ;;  %v2431_v43 = vld [vmem:[%s3358_s1 + $0xc4] ss:$8 sps:$4 sm:$0xff]   ;;  %s2834_s10 = scalar_lea.vmem %s3357_s0, %s2355_s21  ;;  %v2430_v44 = vld [vmem:[%s3358_s1 + $0x1d0] ss:$8 sps:$4 sm:$0xff]   ;;  %v2433_v46 = vld [vmem:[%s3358_s1 + $0xc0] ss:$8 sps:$4 sm:$0xff]  }
  0x1b   : > { %1227 = vmatprep.subr.bf16.mxu1 %v2392_v17  ;;  %v2434_v45 = vld [vmem:[%s3358_s1 + $0x1c4] ss:$8 sps:$4 sm:$0xff]   ;;  %v2437_v48 = vld [vmem:[%s3358_s1 + $0xb4] ss:$8 sps:$4 sm:$0xff]   ;;  %v2436_v49 = vld [vmem:[%s3358_s1 + $0x1c0] ss:$8 sps:$4 sm:$0xff]  }
  0x1c   : > { %v2462_v47 = vld [vmem:[%s2834_s10 + $0x4] ss:$28 sps:$4 sm:$0xff]   ;;  %v2440_v50 = vld [vmem:[%s3358_s1 + $0x1b4] ss:$8 sps:$4 sm:$0xff]   ;;  %v2469_v51 = vld [vmem:[%s2834_s10 + $0xc] ss:$28 sps:$4 sm:$0xff]  }
  0x1d   : > { %1155 = vmatpush1.bf16.msra.mxu0 %v2391_v18  ;;  %1178 = vmatprep.mubr.bf16.mxu0 %v2462_v47  ;;  %v2439_v52 = vld [vmem:[%s3358_s1 + $0xb0] ss:$8 sps:$4 sm:$0xff]   ;;  %v2443_v53 = vld [vmem:[%s3358_s1 + $0xa4] ss:$8 sps:$4 sm:$0xff]   ;;  %v2445_v56 = vld [vmem:[%s3358_s1 + $0xa0] ss:$8 sps:$4 sm:$0xff]  }
  0x1e   : > { %1156 = vmatprep.subr.bf16.mxu0 %v2395_v19  ;;  %1228 = vmatpush1.bf16.msra.mxu1 %v2394_v20  ;;  %v2442_v54 = vld [vmem:[%s3358_s1 + $0x1b0] ss:$8 sps:$4 sm:$0xff]   ;;  %v2446_v55 = vld [vmem:[%s3358_s1 + $0x1a4] ss:$8 sps:$4 sm:$0xff]   ;;  %v2449_v57 = vld [vmem:[%s3358_s1 + $0x94] ss:$8 sps:$4 sm:$0xff]  }
  0x1f   : > { %1229 = vmatprep.subr.bf16.mxu1 %v2398_v21  ;;  %1251 = vmatprep.mubr.bf16.mxu1 %v2469_v51  ;;  %v2448_v58 = vld [vmem:[%s3358_s1 + $0x1a0] ss:$8 sps:$4 sm:$0xff]   ;;  %v2452_v59 = vld [vmem:[%s3358_s1 + $0x194] ss:$8 sps:$4 sm:$0xff]   ;;  %v2451_v60 = vld [vmem:[%s3358_s1 + $0x90] ss:$8 sps:$4 sm:$0xff]  }
  0x20   : > { %v2455_v61 = vld [vmem:[%s3358_s1 + $0x84] ss:$8 sps:$4 sm:$0xff]   ;;  %v2454_v62 = vld [vmem:[%s3358_s1 + $0x190] ss:$8 sps:$4 sm:$0xff]   ;;  %v2457_v0 = vld [vmem:[%s3358_s1 + $0x80] ss:$8 sps:$4 sm:$0xff]  }
  0x21   : > { %1157 = vmatpush1.bf16.msra.mxu0 %v2397_v22  ;;  %v2458_v63 = vld [vmem:[%s3358_s1 + $0x184] ss:$8 sps:$4 sm:$0xff]   ;;  %v2463_v1 = vld [vmem:[%s3358_s1 + $0x180] ss:$8 sps:$4 sm:$0xff]   ;;  %v2466_v3 = vld [vmem:[%s3358_s1 + $0x274] ss:$8 sps:$4 sm:$0xff]  }
  0x22   : > { %1158 = vmatprep.subr.bf16.mxu0 %v2401_v23  ;;  %1230 = vmatpush1.bf16.msra.mxu1 %v2400_v24  ;;  %v2460_v2 = vld [vmem:[%s2834_s10] ss:$28 sps:$4 sm:$0xff]   ;;  %v2464_v4 = vld [vmem:[%s3358_s1 + $0x270] ss:$8 sps:$4 sm:$0xff]   ;;  %v2467_v5 = vld [vmem:[%s2834_s10 + $0x8] ss:$28 sps:$4 sm:$0xff]  }
  0x23   : > { %1231 = vmatprep.subr.bf16.mxu1 %v2404_v25  ;;  %v2493_v6 = vld [vmem:[%s3358_s1 + $0x374] ss:$8 sps:$4 sm:$0xff]   ;;  %v2472_v7 = vld [vmem:[%s3358_s1 + $0x264] ss:$8 sps:$4 sm:$0xff]   ;;  %v2491_v9 = vld [vmem:[%s3358_s1 + $0x370] ss:$8 sps:$4 sm:$0xff]  }
  0x24   : > { %v2500_v8 = vld [vmem:[%s2834_s10 + $0x3c] ss:$28 sps:$4 sm:$0xff]   ;;  %v2503_v10 = vld [vmem:[%s2834_s10 + $0x44] ss:$28 sps:$4 sm:$0xff]   ;;  %v2518_v20 = vld [vmem:[%s2834_s10 + $0x74] ss:$28 sps:$4 sm:$0xff]  }
  0x25   : > { %1159 = vmatpush1.bf16.msra.mxu0 %v2403_v26  ;;  %v2499_v11 = vld [vmem:[%s3358_s1 + $0x364] ss:$8 sps:$4 sm:$0xff]   ;;  %v2470_v12 = vld [vmem:[%s3358_s1 + $0x260] ss:$8 sps:$4 sm:$0xff]   ;;  %v2475_v13 = vld [vmem:[%s3358_s1 + $0x254] ss:$8 sps:$4 sm:$0xff]  }
  0x26   : > { %1160 = vmatprep.subr.bf16.mxu0 %v2407_v27  ;;  %1232 = vmatpush1.bf16.msra.mxu1 %v2406_v28  ;;  %v2473_v14 = vld [vmem:[%s3358_s1 + $0x250] ss:$8 sps:$4 sm:$0xff]   ;;  %v2497_v15 = vld [vmem:[%s3358_s1 + $0x360] ss:$8 sps:$4 sm:$0xff]   ;;  %v2478_v16 = vld [vmem:[%s3358_s1 + $0x244] ss:$8 sps:$4 sm:$0xff]  }
  0x27   : > { %1233 = vmatprep.subr.bf16.mxu1 %v2410_v29  ;;  %v2502_v17 = vld [vmem:[%s2834_s10 + $0x38] ss:$28 sps:$4 sm:$0xff]   ;;  %v2505_v19 = vld [vmem:[%s2834_s10 + $0x40] ss:$28 sps:$4 sm:$0xff]   ;;  %v2517_v23 = vld [vmem:[%s3358_s1 + $0x344] ss:$8 sps:$4 sm:$0xff]  }
  0x28   : > { %v2511_v18 = vld [vmem:[%s3358_s1 + $0x354] ss:$8 sps:$4 sm:$0xff]   ;;  %v2509_v21 = vld [vmem:[%s3358_s1 + $0x350] ss:$8 sps:$4 sm:$0xff]   ;;  %v2476_v24 = vld [vmem:[%s3358_s1 + $0x240] ss:$8 sps:$4 sm:$0xff]  }
  0x29   : > { %1161 = vmatpush1.bf16.msra.mxu0 %v2409_v30  ;;  %v2521_v22 = vld [vmem:[%s2834_s10 + $0x7c] ss:$28 sps:$4 sm:$0xff]   ;;  %v2515_v27 = vld [vmem:[%s3358_s1 + $0x340] ss:$8 sps:$4 sm:$0xff]   ;;  %v2484_v28 = vld [vmem:[%s3358_s1 + $0x224] ss:$8 sps:$4 sm:$0xff]  }
  0x2a   : > { %1162 = vmatprep.subr.bf16.mxu0 %v2413_v31  ;;  %1234 = vmatpush1.bf16.msra.mxu1 %v2412_v32  ;;  %v2481_v25 = vld [vmem:[%s3358_s1 + $0x234] ss:$8 sps:$4 sm:$0xff]   ;;  %v2479_v26 = vld [vmem:[%s3358_s1 + $0x230] ss:$8 sps:$4 sm:$0xff]   ;;  %v2536_v32 = vld [vmem:[%s2834_s10 + $0xac] ss:$28 sps:$4 sm:$0xff]  }
  0x2b   : > { %1235 = vmatprep.subr.bf16.mxu1 %v2416_v33  ;;  %v2520_v29 = vld [vmem:[%s2834_s10 + $0x70] ss:$28 sps:$4 sm:$0xff]   ;;  %v2529_v30 = vld [vmem:[%s3358_s1 + $0x334] ss:$8 sps:$4 sm:$0xff]   ;;  %v2488_v47 = vld [vmem:[%s3358_s1 + $0x200] ss:$8 sps:$4 sm:$0xff]  }
  0x2c   : > { %v2523_v31 = vld [vmem:[%s2834_s10 + $0x78] ss:$28 sps:$4 sm:$0xff]  }
  0x2d   : > { %1163 = vmatpush2.bf16.msra.mxu0 %v2415_v34  ;;  %v2527_v33 = vld [vmem:[%s3358_s1 + $0x330] ss:$8 sps:$4 sm:$0xff]  }
  0x2e   : > { %1164 = vmatprep.subr.bf16.mxu0 %v2419_v35  ;;  %1236 = vmatpush2.bf16.msra.mxu1 %v2418_v36  ;;  %v2539_v34 = vld [vmem:[%s2834_s10 + $0xb4] ss:$28 sps:$4 sm:$0xff]   ;;  %v2535_v35 = vld [vmem:[%s3358_s1 + $0x324] ss:$8 sps:$4 sm:$0xff]   ;;  %v2482_v36 = vld [vmem:[%s3358_s1 + $0x220] ss:$8 sps:$4 sm:$0xff]  }
  0x2f   : > { %1237 = vmatprep.subr.bf16.mxu1 %v2422_v37  ;;  %v2487_v37 = vld [vmem:[%s3358_s1 + $0x214] ss:$8 sps:$4 sm:$0xff]   ;;  %v2494_v51 = vld [vmem:[%s3358_s1 + $0x2f0] ss:$8 sps:$4 sm:$0xff]  }
  0x31   : > { %1165 = vmatpush2.bf16.msra.mxu0 %v2421_v38  ;;  %v2533_v38 = vld [vmem:[%s3358_s1 + $0x320] ss:$8 sps:$4 sm:$0xff]  }
  0x32   : > { %1166 = vmatprep.subr.bf16.mxu0 %v2425_v39  ;;  %1238 = vmatpush2.bf16.msra.mxu1 %v2424_v40  ;;  %v2485_v39 = vld [vmem:[%s3358_s1 + $0x210] ss:$8 sps:$4 sm:$0xff]   ;;  %v2538_v40 = vld [vmem:[%s2834_s10 + $0xa8] ss:$28 sps:$4 sm:$0xff]  }
  0x33   : > { %1239 = vmatprep.subr.bf16.mxu1 %v2428_v41  ;;  %v2547_v41 = vld [vmem:[%s3358_s1 + $0x314] ss:$8 sps:$4 sm:$0xff]  }
  0x35   : > { %1167 = vmatpush2.bf16.msra.mxu0 %v2427_v42  ;;  %v2490_v42 = vld [vmem:[%s3358_s1 + $0x204] ss:$8 sps:$4 sm:$0xff]  }
  0x36   : > { %1168 = vmatprep.subr.bf16.mxu0 %v2431_v43  ;;  %1240 = vmatpush2.bf16.msra.mxu1 %v2430_v44  ;;  %v2560_v43 = vld [vmem:[%s2834_s10 + $0x14] ss:$28 sps:$4 sm:$0xff]  }
  0x37   : > { %1241 = vmatprep.subr.bf16.mxu1 %v2434_v45  ;;  %v2541_v44 = vld [vmem:[%s2834_s10 + $0xb0] ss:$28 sps:$4 sm:$0xff]  }
  0x38   : > { %v2545_v45 = vld [vmem:[%s3358_s1 + $0x310] ss:$8 sps:$4 sm:$0xff]  }
  0x39   : > { %1169 = vmatpush2.bf16.msra.mxu0 %v2433_v46  ;;  %v2553_v46 = vld [vmem:[%s3358_s1 + $0x304] ss:$8 sps:$4 sm:$0xff]  }
  0x3a   : > { %1170 = vmatprep.subr.bf16.mxu0 %v2437_v48  ;;  %1242 = vmatpush2.bf16.msra.mxu1 %v2436_v49  ;;  %v2496_v48 = vld [vmem:[%s3358_s1 + $0x2f4] ss:$8 sps:$4 sm:$0xff]   ;;  %v2551_v49 = vld [vmem:[%s3358_s1 + $0x300] ss:$8 sps:$4 sm:$0xff]  }
  0x3b   : > { %1243 = vmatprep.subr.bf16.mxu1 %v2440_v50  ;;  %v2645_v50 = vmov 0  }
  0x3d   : > { %1171 = vmatpush2.bf16.msra.mxu0 %v2439_v52  ;;  %v2508_v52 = vld [vmem:[%s3358_s1 + $0x2e4] ss:$8 sps:$4 sm:$0xff]  }
  0x3e   : > { %1172 = vmatprep.subr.bf16.mxu0 %v2443_v53  ;;  %1244 = vmatpush2.bf16.msra.mxu1 %v2442_v54  ;;  %v2557_v53 = vld [vmem:[%s2834_s10 + $0x18] ss:$28 sps:$4 sm:$0xff]   ;;  %v2506_v54 = vld [vmem:[%s3358_s1 + $0x2e0] ss:$8 sps:$4 sm:$0xff]  }
  0x3f   : > { %1245 = vmatprep.subr.bf16.mxu1 %v2446_v55  ;;  %v2514_v55 = vld [vmem:[%s3358_s1 + $0x2d4] ss:$8 sps:$4 sm:$0xff]  }
  0x41   : > { %1173 = vmatpush2.bf16.msra.mxu0 %v2445_v56  ;;  %v2512_v56 = vld [vmem:[%s3358_s1 + $0x2d0] ss:$8 sps:$4 sm:$0xff]  }
  0x42   : > { %1174 = vmatprep.subr.bf16.mxu0 %v2449_v57  ;;  %1246 = vmatpush2.bf16.msra.mxu1 %v2448_v58  ;;  %v2526_v57 = vld [vmem:[%s3358_s1 + $0x2c4] ss:$8 sps:$4 sm:$0xff]  }
  0x43   : > { %1247 = vmatprep.subr.bf16.mxu1 %v2452_v59  ;;  %v2561_v58 = vld [vmem:[%s2834_s10 + $0x50] ss:$28 sps:$4 sm:$0xff]   ;;  %v2524_v59 = vld [vmem:[%s3358_s1 + $0x2c0] ss:$8 sps:$4 sm:$0xff]  }
  0x45   : > { %1175 = vmatpush2.bf16.msra.mxu0 %v2451_v60  ;;  %v2532_v60 = vld [vmem:[%s3358_s1 + $0x2b4] ss:$8 sps:$4 sm:$0xff]  }
  0x46   : > { %1176 = vmatprep.subr.bf16.mxu0 %v2455_v61  ;;  %1248 = vmatpush2.bf16.msra.mxu1 %v2454_v62  ;;  %v2530_v61 = vld [vmem:[%s3358_s1 + $0x2b0] ss:$8 sps:$4 sm:$0xff]   ;;  %v2544_v62 = vld [vmem:[%s3358_s1 + $0x2a4] ss:$8 sps:$4 sm:$0xff]  }
  0x47   : > { %1249 = vmatprep.subr.bf16.mxu1 %v2458_v63  ;;  %v2565_v63 = vld [vmem:[%s2834_s10 + $0x88] ss:$28 sps:$4 sm:$0xff]  }
  0x49   : > { %1177 = vmatpush2.bf16.msra.mxu0 %v2457_v0  ;;  %v2542_v0 = vld [vmem:[%s3358_s1 + $0x2a0] ss:$8 sps:$4 sm:$0xff]  }
  0x4a   : > { %1292 = vmatprep.subr.bf16.mxu0 %v2466_v3  ;;  %1250 = vmatpush2.bf16.msra.mxu1 %v2463_v1  ;;  %v2550_v1 = vld [vmem:[%s3358_s1 + $0x294] ss:$8 sps:$4 sm:$0xff]   ;;  %v2556_v3 = vld [vmem:[%s3358_s1 + $0x284] ss:$8 sps:$4 sm:$0xff]  }
  0x4b   : > { %1365 = vmatprep.subr.bf16.mxu1 %v2493_v6  ;;  %v2558_v6 = vld [vmem:[%s2834_s10 + $0x10] ss:$28 sps:$4 sm:$0xff]  }
  0x4c   : > { %1179 = vmatmul.mubr.bf16.vlgmr.msra.gmra.mxu0 %v2460_v2  ;;  %v2548_v2 = vld [vmem:[%s3358_s1 + $0x290] ss:$8 sps:$4 sm:$0xff]  }
  0x4d   : > { %1293 = vmatpush1.bf16.msra.mxu0 %v2464_v4  ;;  %1188 = vmatprep.mubr.bf16.mxu0 %v2500_v8  ;;  %v2569_v4 = vld [vmem:[%s2834_s10 + $0xc0] ss:$28 sps:$4 sm:$0xff]   ;;  %v2564_v8 = vld [vmem:[%s2834_s10 + $0x48] ss:$28 sps:$4 sm:$0xff]  }
  0x4e   : > { %1252 = vmatmul.mubr.bf16.vlgmr.msra.gmra.mxu1 %v2467_v5  ;;  %1294 = vmatprep.subr.bf16.mxu0 %v2472_v7  ;;  %v2554_v5 = vld [vmem:[%s3358_s1 + $0x280] ss:$8 sps:$4 sm:$0xff]  }
  0x4f   : > { %1366 = vmatpush1.bf16.msra.mxu1 %v2491_v9  ;;  %1261 = vmatprep.mubr.bf16.mxu1 %v2503_v10  ;;  %v2562_v7 = vld [vmem:[%s2834_s10 + $0x4c] ss:$28 sps:$4 sm:$0xff]   ;;  %v2566_v9 = vld [vmem:[%s2834_s10 + $0x84] ss:$28 sps:$4 sm:$0xff]   ;;  %v2573_v10 = vld [vmem:[%s3360_s3 + $0x70] ss:$8 sps:$4 sm:$0xff]  }
  0x50   : > { %1367 = vmatprep.subr.bf16.mxu1 %v2499_v11  ;;  %v2575_v11 = vld [vmem:[%s3360_s3 + $0x74] ss:$8 sps:$4 sm:$0xff]  }
  0x51   : > { %1295 = vmatpush1.bf16.msra.mxu0 %v2470_v12  ;;  %v2578_v12 = vld [vmem:[%s3360_s3 + $0x64] ss:$8 sps:$4 sm:$0xff]  }
  0x52   : > { %1296 = vmatprep.subr.bf16.mxu0 %v2475_v13  ;;  %v2568_v13 = vld [vmem:[%s2834_s10 + $0x80] ss:$28 sps:$4 sm:$0xff]  }
  0x53   : > { %1368 = vmatpush1.bf16.msra.mxu1 %v2497_v15  ;;  %v2570_v15 = vld [vmem:[%s2834_s10 + $0xbc] ss:$28 sps:$4 sm:$0xff]  }
  0x54   : > { %1189 = vmatmul.mubr.bf16.gmra.mxu0 %v2502_v17  ;;  %1369 = vmatprep.subr.bf16.mxu1 %v2511_v18  ;;  %v2579_v17 = vld [vmem:[%s3360_s3 + $0x50] ss:$8 sps:$4 sm:$0xff]   ;;  %v2584_v18 = vld [vmem:[%s3360_s3 + $0x44] ss:$8 sps:$4 sm:$0xff]  }
  0x55   : > { %1297 = vmatpush1.bf16.msra.mxu0 %v2473_v14  ;;  %1198 = vmatprep.mubr.bf16.mxu0 %v2518_v20  ;;  %v2576_v14 = vld [vmem:[%s3360_s3 + $0x60] ss:$8 sps:$4 sm:$0xff]  }
  0x56   : > { %1298 = vmatprep.subr.bf16.mxu0 %v2478_v16  ;;  %1262 = vmatmul.mubr.bf16.gmra.mxu1 %v2505_v19  ;;  %v2581_v16 = vld [vmem:[%s3360_s3 + $0x54] ss:$8 sps:$4 sm:$0xff]   ;;  %v2582_v20 = vld [vmem:[%s3360_s3 + $0x40] ss:$8 sps:$4 sm:$0xff]  }
  0x57   : > { %1370 = vmatpush1.bf16.msra.mxu1 %v2509_v21  ;;  %1271 = vmatprep.mubr.bf16.mxu1 %v2521_v22  ;;  %v2572_v19 = vld [vmem:[%s2834_s10 + $0xb8] ss:$28 sps:$4 sm:$0xff]  }
  0x58   : > { %1371 = vmatprep.subr.bf16.mxu1 %v2517_v23  ;;  %v2587_v21 = vld [vmem:[%s3360_s3 + $0x34] ss:$8 sps:$4 sm:$0xff]   ;;  %v2585_v22 = vld [vmem:[%s3360_s3 + $0x30] ss:$8 sps:$4 sm:$0xff]   ;;  %v2590_v23 = vld [vmem:[%s3360_s3 + $0x24] ss:$8 sps:$4 sm:$0xff]  }
  0x59   : > { %1299 = vmatpush1.bf16.msra.mxu0 %v2476_v24  ;;  %v2588_v24 = vld [vmem:[%s3360_s3 + $0x20] ss:$8 sps:$4 sm:$0xff]  }
  0x5a   : > { %1300 = vmatprep.subr.bf16.mxu0 %v2481_v25  ;;  %v2593_v25 = vld [vmem:[%s3360_s3 + $0x14] ss:$8 sps:$4 sm:$0xff]  }
  0x5b   : > { %1372 = vmatpush1.bf16.msra.mxu1 %v2515_v27  ;;  %v2596_v27 = vld [vmem:[%s3360_s3 + $0x4] ss:$8 sps:$4 sm:$0xff]  }
  0x5c   : > { %1199 = vmatmul.mubr.bf16.gmra.mxu0 %v2520_v29  ;;  %1373 = vmatprep.subr.bf16.mxu1 %v2529_v30  ;;  %v2599_v29 = vld [vmem:[%s3360_s3 + $0xf4] ss:$8 sps:$4 sm:$0xff]   ;;  %v2597_v30 = vld [vmem:[%s3360_s3 + $0xf0] ss:$8 sps:$4 sm:$0xff]  }
  0x5d   : > { %1301 = vmatpush1.bf16.msra.mxu0 %v2479_v26  ;;  %1208 = vmatprep.mubr.bf16.mxu0 %v2536_v32  ;;  %v2591_v26 = vld [vmem:[%s3360_s3 + $0x10] ss:$8 sps:$4 sm:$0xff]   ;;  %v2600_v32 = vld [vmem:[%s3360_s3 + $0xe0] ss:$8 sps:$4 sm:$0xff]  }
  0x5e   : > { %1302 = vmatprep.subr.bf16.mxu0 %v2484_v28  ;;  %1272 = vmatmul.mubr.bf16.gmra.mxu1 %v2523_v31  ;;  %v2594_v28 = vld [vmem:[%s3360_s3] ss:$8 sps:$4 sm:$0xff]   ;;  %v2602_v31 = vld [vmem:[%s3360_s3 + $0xe4] ss:$8 sps:$4 sm:$0xff]  }
  0x5f   : > { %1374 = vmatpush1.bf16.msra.mxu1 %v2527_v33  ;;  %1281 = vmatprep.mubr.bf16.mxu1 %v2539_v34  ;;  %v2605_v33 = vld [vmem:[%s3360_s3 + $0xd4] ss:$8 sps:$4 sm:$0xff]   ;;  %v2603_v34 = vld [vmem:[%s3360_s3 + $0xd0] ss:$8 sps:$4 sm:$0xff]  }
  0x60   : > { %1375 = vmatprep.subr.bf16.mxu1 %v2535_v35  ;;  %v2608_v35 = vld [vmem:[%s3360_s3 + $0xc4] ss:$8 sps:$4 sm:$0xff]  }
  0x61   : > { %1303 = vmatpush1.bf16.msra.mxu0 %v2482_v36  ;;  %v2606_v36 = vld [vmem:[%s3360_s3 + $0xc0] ss:$8 sps:$4 sm:$0xff]  }
  0x62   : > { %1304 = vmatprep.subr.bf16.mxu0 %v2487_v37  ;;  %v2611_v37 = vld [vmem:[%s3360_s3 + $0xb4] ss:$8 sps:$4 sm:$0xff]  }
  0x63   : > { %1376 = vmatpush1.bf16.msra.mxu1 %v2533_v38  ;;  %v2609_v38 = vld [vmem:[%s3360_s3 + $0xb0] ss:$8 sps:$4 sm:$0xff]  }
  0x64   : > { %1209 = vmatmul.mubr.bf16.gmra.mxu0 %v2538_v40  ;;  %1377 = vmatprep.subr.bf16.mxu1 %v2547_v41  ;;  %v2612_v40 = vld [vmem:[%s3360_s3 + $0xa0] ss:$8 sps:$4 sm:$0xff]   ;;  %v2617_v41 = vld [vmem:[%s3360_s3 + $0x94] ss:$8 sps:$4 sm:$0xff]  }
  0x65   : > { %1305 = vmatpush1.bf16.msra.mxu0 %v2485_v39  ;;  %1324 = vmatprep.mubr.bf16.mxu0 %v2560_v43  ;;  %v2614_v39 = vld [vmem:[%s3360_s3 + $0xa4] ss:$8 sps:$4 sm:$0xff]  }
  0x66   : > { %1306 = vmatprep.subr.bf16.mxu0 %v2490_v42  ;;  %1282 = vmatmul.mubr.bf16.gmra.mxu1 %v2541_v44  ;;  %v2615_v42 = vld [vmem:[%s3360_s3 + $0x90] ss:$8 sps:$4 sm:$0xff]   ;;  %v2620_v43 = vld [vmem:[%s3360_s3 + $0x84] ss:$8 sps:$4 sm:$0xff]   ;;  %v2618_v44 = vld [vmem:[%s3360_s3 + $0x80] ss:$8 sps:$4 sm:$0xff]  }
  0x67   : > { %1378 = vmatpush1.bf16.msra.mxu1 %v2545_v45  ;;  %1397 = vmatprep.mubr.bf16.mxu1 %v2645_v50  ;;  %v2621_v45 = vld [vmem:[%s3362_s5 + $0x78] sm:$0xff]  }
  0x68   : > { %1379 = vmatprep.subr.bf16.mxu1 %v2553_v46  ;;  %v2622_v46 = vld [vmem:[%s3362_s5 + $0x38] sm:$0xff]  }
  0x69   : > { %1307 = vmatpush1.bf16.msra.mxu0 %v2488_v47  ;;  %v2623_v47 = vld [vmem:[%s3362_s5 + $0x70] sm:$0xff]  }
  0x6a   : > { %1308 = vmatprep.subr.bf16.mxu0 %v2496_v48  ;;  %v2624_v48 = vld [vmem:[%s3362_s5 + $0x30] sm:$0xff]  }
  0x6b   : > { %1380 = vmatpush1.bf16.msra.mxu1 %v2551_v49  ;;  %v2625_v49 = vld [vmem:[%s3362_s5 + $0x68] sm:$0xff]  }
  0x6c   : > { %1698 = vmatprep.subr.bf16.mxu1 %v2575_v11 }
  0x6d   : > { %1309 = vmatpush2.bf16.msra.mxu0 %v2494_v51  ;;  %v2627_v51 = vld [vmem:[%s3362_s5 + $0x60] sm:$0xff]  }
  0x6e   : > { %1310 = vmatprep.subr.bf16.mxu0 %v2508_v52  ;;  %1398 = vmatmul.mubr.bf16.vlgmr.msra.gmra.mxu1 %v2557_v53  ;;  %v2628_v52 = vld [vmem:[%s3362_s5 + $0x20] sm:$0xff]   ;;  %v2629_v53 = vld [vmem:[%s3362_s5 + $0x58] sm:$0xff]  }
  0x6f   : > { %1407 = vmatprep.mubr.bf16.mxu1 %v2645_v50  ;;  %1699 = vmatpush1.bf16.msra.mxu1 %v2573_v10 }
  0x70   : > { %1700 = vmatprep.subr.bf16.mxu1 %v2578_v12 }
  0x71   : > { %1311 = vmatpush2.bf16.msra.mxu0 %v2506_v54  ;;  %v2630_v54 = vld [vmem:[%s3362_s5 + $0x18] sm:$0xff]  }
  0x72   : > { %1312 = vmatprep.subr.bf16.mxu0 %v2514_v55 }
  0x73   : > { %1701 = vmatpush1.bf16.msra.mxu1 %v2576_v14 }
  0x74   : > { %1702 = vmatprep.subr.bf16.mxu1 %v2581_v16 }
  0x75   : > { %1313 = vmatpush2.bf16.msra.mxu0 %v2512_v56 }
  0x76   : > { %1314 = vmatprep.subr.bf16.mxu0 %v2526_v57  ;;  %1408 = vmatmul.mubr.bf16.gmra.mxu1 %v2561_v58 }
  0x77   : > { %1417 = vmatprep.mubr.bf16.mxu1 %v2645_v50  ;;  %1703 = vmatpush1.bf16.msra.mxu1 %v2579_v17 }
  0x78   : > { %1704 = vmatprep.subr.bf16.mxu1 %v2584_v18 }
  0x79   : > { %1315 = vmatpush2.bf16.msra.mxu0 %v2524_v59 }
  0x7a   : > { %1316 = vmatprep.subr.bf16.mxu0 %v2532_v60 }
  0x7b   : > { %1705 = vmatpush1.bf16.msra.mxu1 %v2582_v20 }
  0x7c   : > { %1706 = vmatprep.subr.bf16.mxu1 %v2587_v21  ;;  %v432_v21 = vlaneseq }
  0x7d   : > { %1317 = vmatpush2.bf16.msra.mxu0 %v2530_v61 }
  0x7e   : > { %1318 = vmatprep.subr.bf16.mxu0 %v2544_v62  ;;  %1418 = vmatmul.mubr.bf16.gmra.mxu1 %v2565_v63 }
  0x7f   : > { %1427 = vmatprep.mubr.bf16.mxu1 %v2645_v50  ;;  %1707 = vmatpush1.bf16.msra.mxu1 %v2585_v22  ;;  %v2626_v50 = vld [vmem:[%s3362_s5 + $0x28] sm:$0xff]  }
  0x80   : > { %1708 = vmatprep.subr.bf16.mxu1 %v2590_v23 }
  0x81   : > { %1319 = vmatpush2.bf16.msra.mxu0 %v2542_v0 }
  0x82   : > { %1320 = vmatprep.subr.bf16.mxu0 %v2550_v1 }
  0x83   : > { %1709 = vmatpush1.bf16.msra.mxu1 %v2588_v24  ;;  %v3224_v24 = vshrl.u32 %v432_v21, 7 }
  0x84   : > { %1710 = vmatprep.subr.bf16.mxu1 %v2593_v25 }
  0x85   : > { %1321 = vmatpush2.bf16.msra.mxu0 %v2548_v2 }
  0x86   : > { %1322 = vmatprep.subr.bf16.mxu0 %v2556_v3  ;;  %1428 = vmatmul.mubr.bf16.gmra.mxu1 %v2569_v4 }
  0x87   : > { %1711 = vmatpush1.bf16.msra.mxu1 %v2591_v26 }
  0x88   : > { %1712 = vmatprep.subr.bf16.mxu1 %v2596_v27  ;;  %v434_v27 = vsub.s32 0, %v3224_v24 }
  0x89   : > { %1323 = vmatpush2.bf16.msra.mxu0 %v2554_v5 }
  0x8a   : > { %2315 = vmatprep.subr.bf16.mxu0 %v2621_v45 }
  0x8b   : > { %1713 = vmatpush1.bf16.msra.mxu1 %v2594_v28  ;;  %v438_v28 = vsub.s32 1, %v3224_v24 }
  0x8c   : > { %1325 = vmatmul.mubr.bf16.vlgmr.msra.gmra.mxu0 %v2558_v6  ;;  %1714 = vmatprep.subr.bf16.mxu1 %v2599_v29  ;;  %v430_v29 = vld [vmem:[%s3359_s2] sm:$0x3] }
  0x8d   : > { %1334 = vmatprep.mubr.bf16.mxu0 %v2562_v7  ;;  %2316 = vmatpush3.bf16.msra.mxu0 %v2622_v46 }
  0x8e   : > { %2317 = vmatprep.subr.bf16.mxu0 %v2623_v47 }
  0x8f   : > { %1715 = vmatpush2.bf16.msra.mxu1 %v2597_v30 }
  0x90   : > { %1716 = vmatprep.subr.bf16.mxu1 %v2602_v31 }
  0x91   : > { %2318 = vmatpush3.bf16.msra.mxu0 %v2624_v48 }
  0x92   : > { %2319 = vmatprep.subr.bf16.mxu0 %v2625_v49 }
  0x93   : > { %1717 = vmatpush2.bf16.msra.mxu1 %v2600_v32  ;;  %v3239_v32 = vrot.slane %v430_v29, %v434_v27 }
  0x94   : > { %1335 = vmatmul.mubr.bf16.gmra.mxu0 %v2564_v8  ;;  %1718 = vmatprep.subr.bf16.mxu1 %v2605_v33  ;;  %v3243_v33 = vrot.slane %v430_v29, %v438_v28 }
  0x95   : > { %1344 = vmatprep.mubr.bf16.mxu0 %v2566_v9  ;;  %2320 = vmatpush3.bf16.msra.mxu0 %v2626_v50 }
  0x96   : > { %2321 = vmatprep.subr.bf16.mxu0 %v2627_v51 }
  0x97   : > { %1719 = vmatpush2.bf16.msra.mxu1 %v2603_v34 }
  0x98   : > { %1720 = vmatprep.subr.bf16.mxu1 %v2608_v35 }
  0x99   : > { %2322 = vmatpush3.bf16.msra.mxu0 %v2628_v52 }
  0x9a   : > { %2323 = vmatprep.subr.bf16.mxu0 %v2629_v53 }
  0x9b   : > { %1721 = vmatpush2.bf16.msra.mxu1 %v2606_v36 }
  0x9c   : > { %1345 = vmatmul.mubr.bf16.gmra.mxu0 %v2568_v13  ;;  %1722 = vmatprep.subr.bf16.mxu1 %v2611_v37 }
  0x9d   : > { %1354 = vmatprep.mubr.bf16.mxu0 %v2570_v15  ;;  %2324 = vmatpush3.bf16.msra.mxu0 %v2630_v54 }
  0x9f   : > { %1723 = vmatpush2.bf16.msra.mxu1 %v2609_v38 }
  0xa0   : > { %1724 = vmatprep.subr.bf16.mxu1 %v2614_v39 }
  0xa3   : > { %1725 = vmatpush2.bf16.msra.mxu1 %v2612_v40 }
  0xa4   : > { %1355 = vmatmul.mubr.bf16.gmra.mxu0 %v2572_v19  ;;  %1726 = vmatprep.subr.bf16.mxu1 %v2617_v41 }
  0xa7   : > { %1727 = vmatpush2.bf16.msra.mxu1 %v2615_v42 }
  0xa8   : > { %1728 = vmatprep.subr.bf16.mxu1 %v2620_v43 }
  0xab   : > { %1729 = vmatpush2.bf16.msra.mxu1 %v2618_v44 }
 0x10c   : > { %v1180_v56 = vpop.f32.mrf.mxu0 }
 0x10d   : > { %v1181_v36 = vadd.f32 %v1180_v56, %v3239_v32 }
 0x10e   : > { %v1253_v55 = vpop.f32.mrf.mxu1  ;;  %v1182_v59 = vpop.f32.mrf.mxu0 }
 0x10f   : > { %v1183_v37 = vadd.f32 %v1182_v59, %v3243_v33  ;;  %v1254_v42 = vadd.f32 %v1253_v55, %v1181_v36 }
 0x110   : > { %v1255_v57 = vpop.f32.mrf.mxu1  ;;  %v1184_v62 = vpop.f32.mrf.mxu0 }
 0x111   : > { %v1185_v39 = vadd.f32 %v1184_v62, %v3239_v32  ;;  %v1256_v43 = vadd.f32 %v1255_v57, %v1183_v37 }
 0x112   : > { %v1257_v58 = vpop.f32.mrf.mxu1  ;;  %v1186_v1 = vpop.f32.mrf.mxu0 }
 0x113   : > { %v1187_v44 = vadd.f32 %v1186_v1, %v3243_v33  ;;  %v1258_v46 = vadd.f32 %v1257_v58, %v1185_v39 }
 0x114   : > { %v1259_v60 = vpop.f32.mrf.mxu1  ;;  %v1190_v3 = vpop.f32.mrf.mxu0 }
 0x115   : > { %v1191_v51 = vadd.f32 %v1190_v3, %v3239_v32  ;;  %v1260_v54 = vadd.f32 %v1259_v60, %v1187_v44 }
 0x116   : > { %v3194_v61 = vpop.f32.mrf.mxu1  ;;  %v1192_v6 = vpop.f32.mrf.mxu0 }
 0x117   : > { %v1193_v52 = vadd.f32 %v1192_v6, %v3243_v33  ;;  %v1264_v29 = vadd.f32 %v3194_v61, %v1191_v51 }
 0x118   : > { %v3196_v63 = vpop.f32.mrf.mxu1  ;;  %v1194_v9 = vpop.f32.mrf.mxu0 }
 0x119   : > { %v1195_v56 = vadd.f32 %v1194_v9, %v3239_v32  ;;  %v1266_v36 = vadd.f32 %v3196_v63, %v1193_v52 }
 0x11a   : > { %v3198_v0 = vpop.f32.mrf.mxu1  ;;  %v1196_v12 = vpop.f32.mrf.mxu0 }
 0x11b   : > { %v1197_v37 = vadd.f32 %v1196_v12, %v3243_v33  ;;  %v1268_v3 = vadd.f32 %v3198_v0, %v1195_v56 }
 0x11c   : > { %v3200_v2 = vpop.f32.mrf.mxu1  ;;  %v1200_v15 = vpop.f32.mrf.mxu0 }
 0x11d   : > { %v1201_v6 = vadd.f32 %v1200_v15, %v3239_v32  ;;  %v1270_v63 = vadd.f32 %v3200_v2, %v1197_v37 }
 0x11e   : > { %v3202_v4 = vpop.f32.mrf.mxu1  ;;  %v3218_v17 = vpop.f32.mrf.mxu0 }
 0x11f   : > { %v1203_v0 = vadd.f32 %v3218_v17, %v3243_v33 }
 0x120   : > { %v3204_v5 = vpop.f32.mrf.mxu1  ;;  %v3220_v19 = vpop.f32.mrf.mxu0 }
 0x121   : > { %v1205_v15 = vadd.f32 %v3220_v19, %v3239_v32  ;;  %v1276_v17 = vadd.f32 %v3204_v5, %v1203_v0 }
 0x122   : > { %v3206_v7 = vpop.f32.mrf.mxu1  ;;  %v3222_v22 = vpop.f32.mrf.mxu0 }
 0x123   : > { %v1207_v56 = vadd.f32 %v3222_v22, %v3243_v33 }
 0x124   : > { %v3208_v8 = vpop.f32.mrf.mxu1  ;;  %v3226_v25 = vpop.f32.mrf.mxu0 }
 0x125   : > { %v1211_v5 = vadd.f32 %v3226_v25, %v3239_v32 }
 0x126   : > { %v3210_v10 = vpop.f32.mrf.mxu1  ;;  %v3235_v30 = vpop.f32.mrf.mxu0 }
 0x128   : > { %v3212_v11 = vpop.f32.mrf.mxu1  ;;  %v3245_v34 = vpop.f32.mrf.mxu0 }
 0x129   : > { %v1215_v37 = vadd.f32 %v3245_v34, %v3239_v32 }
 0x12a   : > { %v3214_v13 = vpop.f32.mrf.mxu1  ;;  %v3249_v38 = vpop.f32.mrf.mxu0 }
 0x12b   : > { %v1217_v32 = vadd.f32 %v3249_v38, %v3243_v33 }
 0x12c   : > { %v3216_v14 = vpop.f32.mrf.mxu1 }
 0x12d   : > { %v1290_v38 = vadd.f32 %v3216_v14, %v1217_v32 }
 0x12e   : > { %v1399_v16 = vpop.f32.mrf.mxu1 }
 0x130   : > { %v1401_v18 = vpop.f32.mrf.mxu1 }
 0x132   : > { %v1403_v20 = vpop.f32.mrf.mxu1 }
 0x134   : > { %v1405_v23 = vpop.f32.mrf.mxu1 }
 0x136   : > { %v3228_v26 = vpop.f32.mrf.mxu1 }
 0x138   : > { %v1411_v31 = vpop.f32.mrf.mxu1 }
 0x13a   : > { %v1413_v35 = vpop.f32.mrf.mxu1 }
 0x13c   : > { %v1415_v41 = vpop.f32.mrf.mxu1 }
 0x13e   : > { %v3253_v50 = vpop.f32.mrf.mxu1 }
 0x140   : > { %v1421_v58 = vpop.f32.mrf.mxu1 }
 0x14c   : > { %v1326_v40 = vpop.f32.mrf.mxu0 }
 0x14d   : > { %v1327_v47 = vadd.f32 %v1326_v40, %v1254_v42 }
 0x14e   : > { %v1328_v45 = vpop.f32.mrf.mxu0 }
 0x14f   : > { %v1329_v48 = vadd.f32 %v1328_v45, %v1256_v43  ;;  %v1400_v55 = vadd.f32 %v1399_v16, %v1327_v47  ;;  %v1423_v43 = vpop.f32.mrf.mxu1 }
 0x150   : > { %v1330_v49 = vpop.f32.mrf.mxu0 }
 0x151   : > { %v1331_v53 = vadd.f32 %v1330_v49, %v1258_v46  ;;  %v1402_v57 = vadd.f32 %v1401_v18, %v1329_v48  ;;  %v1454_v40 = vmul.f32 0.01, %v1400_v55  ;;  %vm1438_vm3 = vcmp.gt.f32.partialorder %v1400_v55, 0.0 }
 0x152   : > { %v1332_v59 = vpop.f32.mrf.mxu0 }
 0x153   : > { %v1404_v62 = vadd.f32 %v1403_v20, %v1331_v53  ;;  %v1333_v1 = vadd.f32 %v1332_v59, %v1260_v54  ;;  %v1455_v16 = vmul.f32 0.01, %v1402_v57  ;;  %vm1439_vm1 = vcmp.gt.f32.partialorder %v1402_v57, 0.0  ;;  %v1425_v54 = vpop.f32.mrf.mxu1 }
 0x154   : > { %v1336_v21 = vpop.f32.mrf.mxu0  ;;  %v1470_v51 = vsel %vm1438_vm3, %v1400_v55, %v1454_v40 }
 0x155   : > { %v1456_v60 = vmul.f32 0.01, %v1404_v62  ;;  %v1406_v39 = vadd.f32 %v1405_v23, %v1333_v1  ;;  %vm1440_vm0 = vcmp.gt.f32.partialorder %v1404_v62, 0.0  ;;  %v1337_v42 = vadd.f32 %v1336_v21, %v1264_v29  ;;  %v1429_v29 = vpop.f32.mrf.mxu1 }
 0x156   : > { %v1338_v9 = vpop.f32.mrf.mxu0  ;;  %v1471_v49 = vsel %vm1439_vm1, %v1402_v57, %v1455_v16 }
 0x157   : > { %v1339_v18 = vadd.f32 %v1338_v9, %v1266_v36  ;;  %vm1441_vm2 = vcmp.gt.f32.partialorder %v1406_v39, 0.0  ;;  %v1457_v20 = vmul.f32 0.01, %v1406_v39  ;;  %v1472_v23 = vsel %vm1440_vm0, %v1404_v62, %v1456_v60 }
 0x158   : > { %v1340_v61 = vpop.f32.mrf.mxu0  ;;  %v1410_v52 = vadd.f32 %v3228_v26, %v1337_v42  ;;  %v1486_v19 = vpack.c.bf16 %v1472_v23, %v1470_v51 }
 0x159   : > { %v1341_v12 = vadd.f32 %v1340_v61, %v1268_v3  ;;  %v1412_v44 = vadd.f32 %v1411_v31, %v1339_v18  ;;  %v1473_v46 = vsel %vm1441_vm2, %v1406_v39, %v1457_v20  ;;  %v1274_v31 = vadd.f32 %v3202_v4, %v1201_v6 }
 0x15a   : > { %v1342_v45 = vpop.f32.mrf.mxu0  ;;  %v1487_v53 = vpack.c.bf16 %v1473_v46, %v1471_v49  ;;  %v1458_v21 = vmul.f32 0.01, %v1410_v52  ;;  %v1280_v4 = vadd.f32 %v3208_v8, %v1207_v56  ;;  %vm1442_vm7 = vcmp.gt.f32.partialorder %v1410_v52, 0.0  ;;  %v1431_v8 = vpop.f32.mrf.mxu1 }
 0x15b   : > { %v1414_v47 = vadd.f32 %v1413_v35, %v1341_v12  ;;  %v1343_v48 = vadd.f32 %v1342_v45, %v1270_v63  ;;  %v1278_v35 = vadd.f32 %v3206_v7, %v1205_v15  ;;  %v1459_v62 = vmul.f32 0.01, %v1412_v44 }
 0x15c   : > { %v1346_v2 = vpop.f32.mrf.mxu0  ;;  %1730 = vmatprep.mubr.bf16.mxu1 %v1487_v53  ;;  %vm1443_vm6 = vcmp.gt.f32.partialorder %v1412_v44, 0.0  ;;  %v1213_v7 = vadd.f32 %v3235_v30, %v3243_v33  ;;  %v1474_v30 = vsel %vm1442_vm7, %v1410_v52, %v1458_v21  ;;  %v1284_v61 = vadd.f32 %v3210_v10, %v1211_v5  ;;  %v2631_v5 = vld [vmem:[%s3362_s5 + $0x50] sm:$0xff]  }
 0x15d   : > { %v1416_v59 = vadd.f32 %v1415_v41, %v1343_v48  ;;  %v1460_v1 = vmul.f32 0.01, %v1414_v47  ;;  %vm1444_vm4 = vcmp.gt.f32.partialorder %v1414_v47, 0.0  ;;  %1731 = vmatmul.mubr.bf16.vlgmr.msra.gmra.mxu1 %v1486_v19  ;;  %v1347_v22 = vadd.f32 %v1346_v2, %v1274_v31  ;;  %v2632_v21 = vld [vmem:[%s3362_s5 + $0x10] sm:$0xff]   ;;  %2325 = vmatprep.subr.bf16.mxu0 %v2631_v5 }
 0x15e   : > { %v1348_v55 = vpop.f32.mrf.mxu0  ;;  %v1475_v40 = vsel %vm1443_vm6, %v1412_v44, %v1459_v62  ;;  %v1286_v42 = vadd.f32 %v3212_v11, %v1213_v7  ;;  %v1288_v63 = vadd.f32 %v3214_v13, %v1215_v37  ;;  %v1433_v44 = vpop.f32.mrf.mxu1  ;;  %2326 = vmatpush3.bf16.msra.mxu0 %v2632_v21  ;;  %v1526_v7 = vld [vmem:[%s3361_s4] sm:$0x3] }
 0x15f   : > { %vm1445_vm5 = vcmp.gt.f32.partialorder %v1416_v59, 0.0  ;;  %v1461_v26 = vmul.f32 0.01, %v1416_v59  ;;  %v1349_v57 = vadd.f32 %v1348_v55, %v1276_v17  ;;  %v1476_v25 = vsel %vm1444_vm4, %v1414_v47, %v1460_v1 }
 0x160   : > { %v1350_v41 = vpop.f32.mrf.mxu0  ;;  %v1420_v16 = vadd.f32 %v3253_v50, %v1347_v22  ;;  %v1435_v2 = vpop.f32.mrf.mxu1  ;;  %v2633_v22 = vld [vmem:[%s3362_s5 + $0x48] sm:$0xff]   ;;  %v3319_v37 = vrot.slane %v1526_v7, %v434_v27 }
 0x161   : > { %v1351_v36 = vadd.f32 %v1350_v41, %v1278_v35  ;;  %v1422_v3 = vadd.f32 %v1421_v58, %v1349_v57  ;;  %v1477_v60 = vsel %vm1445_vm5, %v1416_v59, %v1461_v26  ;;  %v1488_v58 = vpack.c.bf16 %v1476_v25, %v1474_v30  ;;  %v2634_v41 = vld [vmem:[%s3362_s5 + $0x8] sm:$0xff]   ;;  %2327 = vmatprep.subr.bf16.mxu0 %v2633_v22 }
 0x162   : > { %v1352_v6 = vpop.f32.mrf.mxu0  ;;  %v1489_v20 = vpack.c.bf16 %v1477_v60, %v1475_v40  ;;  %v1462_v23 = vmul.f32 0.01, %v1420_v16  ;;  %vm1446_vm11 = vcmp.gt.f32.partialorder %v1420_v16, 0.0  ;;  %2328 = vmatpush3.bf16.msra.mxu0 %v2634_v41 }
 0x163   : > { %v1424_v39 = vadd.f32 %v1423_v43, %v1351_v36  ;;  %v1353_v9 = vadd.f32 %v1352_v6, %v1280_v4  ;;  %v1463_v43 = vmul.f32 0.01, %v1422_v3  ;;  %vm1447_vm10 = vcmp.gt.f32.partialorder %v1422_v3, 0.0  ;;  %v2636_v4 = vld [vmem:[%s3362_s5] sm:$0xff]  }
 0x164   : > { %v1356_v18 = vpop.f32.mrf.mxu0  ;;  %1740 = vmatprep.mubr.bf16.mxu1 %v1489_v20  ;;  %v3315_v36 = vrot.slane %v1526_v7, %v438_v28 }
 0x165   : > { %v1426_v34 = vadd.f32 %v1425_v54, %v1353_v9  ;;  %v1464_v0 = vmul.f32 0.01, %v1424_v39  ;;  %vm1448_vm8 = vcmp.gt.f32.partialorder %v1424_v39, 0.0  ;;  %1741 = vmatmul.mubr.bf16.gmra.mxu1 %v1488_v58  ;;  %v1357_v11 = vadd.f32 %v1356_v18, %v1284_v61 }
 0x166   : > { %v1358_v12 = vpop.f32.mrf.mxu0  ;;  %v1479_v51 = vsel %vm1447_vm10, %v1422_v3, %v1463_v43  ;;  %v1478_v54 = vsel %vm1446_vm11, %v1420_v16, %v1462_v23 }
 0x167   : > { %vm1449_vm9 = vcmp.gt.f32.partialorder %v1426_v34, 0.0  ;;  %v1465_v50 = vmul.f32 0.01, %v1426_v34  ;;  %v1359_v15 = vadd.f32 %v1358_v12, %v1286_v42  ;;  %v1480_v47 = vsel %vm1448_vm8, %v1424_v39, %v1464_v0 }
 0x168   : > { %v1360_v33 = vpop.f32.mrf.mxu0  ;;  %v1430_v52 = vadd.f32 %v1429_v29, %v1357_v11  ;;  %v1490_v19 = vpack.c.bf16 %v1480_v47, %v1478_v54  ;;  %v2635_v29 = vld [vmem:[%s3362_s5 + $0x40] sm:$0xff]  }
 0x169   : > { %v1432_v10 = vadd.f32 %v1431_v8, %v1359_v15  ;;  %v1361_v45 = vadd.f32 %v1360_v33, %v1288_v63  ;;  %v1481_v46 = vsel %vm1449_vm9, %v1426_v34, %v1465_v50  ;;  %2329 = vmatprep.subr.bf16.mxu0 %v2635_v29 }
 0x16a   : > { %v1362_v13 = vpop.f32.mrf.mxu0  ;;  %v1491_v53 = vpack.c.bf16 %v1481_v46, %v1479_v51  ;;  %v1466_v31 = vmul.f32 0.01, %v1430_v52  ;;  %vm1450_vm15 = vcmp.gt.f32.partialorder %v1430_v52, 0.0  ;;  %2330 = vmatpush3.bf16.msra.mxu0 %v2636_v4 }
 0x16b   : > { %v1434_v48 = vadd.f32 %v1433_v44, %v1361_v45  ;;  %v1363_v49 = vadd.f32 %v1362_v13, %v1290_v38  ;;  %v1467_v17 = vmul.f32 0.01, %v1432_v10  ;;  %vm1451_vm12 = vcmp.gt.f32.partialorder %v1432_v10, 0.0 }
 0x16c   : > { %1750 = vmatprep.mubr.bf16.mxu1 %v1491_v53  ;;  %v1482_v26 = vsel %vm1450_vm15, %v1430_v52, %v1466_v31 }
 0x16d   : > { %v1436_v56 = vadd.f32 %v1435_v2, %v1363_v49  ;;  %v1468_v59 = vmul.f32 0.01, %v1434_v48  ;;  %vm1452_vm13 = vcmp.gt.f32.partialorder %v1434_v48, 0.0  ;;  %1751 = vmatmul.mubr.bf16.gmra.mxu1 %v1490_v19  ;;  %v1483_v35 = vsel %vm1451_vm12, %v1432_v10, %v1467_v17 }
 0x16f   : > { %vm1453_vm14 = vcmp.gt.f32.partialorder %v1436_v56, 0.0  ;;  %v1469_v14 = vmul.f32 0.01, %v1436_v56  ;;  %v1484_v55 = vsel %vm1452_vm13, %v1434_v48, %v1468_v59 }
 0x170   : > { %v1492_v57 = vpack.c.bf16 %v1484_v55, %v1482_v26 }
 0x171   : > { %v1485_v62 = vsel %vm1453_vm14, %v1436_v56, %v1469_v14 }
 0x172   : > { %v1493_v1 = vpack.c.bf16 %v1485_v62, %v1483_v35 }
 0x174   : > { %1760 = vmatprep.mubr.bf16.mxu1 %v1493_v1 }
 0x175   : > { %1761 = vmatmul.mubr.bf16.gmra.mxu1 %v1492_v57 }
 0x21d   : > { %v1732_v3 = vpop.f32.mrf.mxu1 }
 0x21e   : > { %v1733_v25 = vadd.f32 %v1732_v3, %v3319_v37 }
 0x21f   : > { %v1734_v6 = vpop.f32.mrf.mxu1 }
 0x220   : > { %v1735_v60 = vadd.f32 %v1734_v6, %v3315_v36  ;;  %v1787_v18 = vmul.f32 0.01, %v1733_v25  ;;  %vm1771_vm2 = vcmp.gt.f32.partialorder %v1733_v25, 0.0 }
 0x221   : > { %v1736_v39 = vpop.f32.mrf.mxu1 }
 0x222   : > { %v1737_v9 = vadd.f32 %v1736_v39, %v3319_v37  ;;  %v1788_v16 = vmul.f32 0.01, %v1735_v60  ;;  %vm1772_vm1 = vcmp.gt.f32.partialorder %v1735_v60, 0.0  ;;  %v1803_v58 = vsel %vm1771_vm2, %v1733_v25, %v1787_v18 }
 0x223   : > { %v1738_v40 = vpop.f32.mrf.mxu1 }
 0x224   : > { %vm1773_vm0 = vcmp.gt.f32.partialorder %v1737_v9, 0.0  ;;  %v1789_v8 = vmul.f32 0.01, %v1737_v9  ;;  %v1739_v28 = vadd.f32 %v1738_v40, %v3315_v36  ;;  %v1804_v32 = vsel %vm1772_vm1, %v1735_v60, %v1788_v16 }
 0x225   : > { %v1742_v24 = vpop.f32.mrf.mxu1 }
 0x226   : > { %vm1774_vm3 = vcmp.gt.f32.partialorder %v1739_v28, 0.0  ;;  %v1790_v27 = vmul.f32 0.01, %v1739_v28  ;;  %v1805_v20 = vsel %vm1773_vm0, %v1737_v9, %v1789_v8  ;;  %v1743_v61 = vadd.f32 %v1742_v24, %v3319_v37 }
 0x227   : > { %v1744_v30 = vpop.f32.mrf.mxu1  ;;  %v1819_v0 = vpack.c.bf16 %v1805_v20, %v1803_v58 }
 0x228   : > { %v1745_v42 = vadd.f32 %v1744_v30, %v3315_v36  ;;  %v1806_v34 = vsel %vm1774_vm3, %v1739_v28, %v1790_v27  ;;  %v1791_v44 = vmul.f32 0.01, %v1743_v61  ;;  %vm1775_vm6 = vcmp.gt.f32.partialorder %v1743_v61, 0.0 }
 0x229   : > { %v1746_v63 = vpop.f32.mrf.mxu1  ;;  %v1820_v43 = vpack.c.bf16 %v1806_v34, %v1804_v32 }
 0x22a   : > { %v1747_v12 = vadd.f32 %v1746_v63, %v3319_v37  ;;  %v1792_v15 = vmul.f32 0.01, %v1745_v42  ;;  %vm1776_vm5 = vcmp.gt.f32.partialorder %v1745_v42, 0.0  ;;  %v1807_v52 = vsel %vm1775_vm6, %v1743_v61, %v1791_v44 }
 0x22b   : > { %v1748_v50 = vpop.f32.mrf.mxu1  ;;  %1994 = vmatprep.mubr.bf16.mxu0 %v1820_v43 }
 0x22c   : > { %vm1777_vm4 = vcmp.gt.f32.partialorder %v1747_v12, 0.0  ;;  %v1793_v23 = vmul.f32 0.01, %v1747_v12  ;;  %v1749_v11 = vadd.f32 %v1748_v50, %v3315_v36  ;;  %1995 = vmatmul.mubr.bf16.vlgmr.msra.gmra.mxu0 %v1819_v0  ;;  %v1808_v46 = vsel %vm1776_vm5, %v1745_v42, %v1792_v15 }
 0x22d   : > { %v1752_v33 = vpop.f32.mrf.mxu1 }
 0x22e   : > { %vm1778_vm7 = vcmp.gt.f32.partialorder %v1749_v11, 0.0  ;;  %v1794_v38 = vmul.f32 0.01, %v1749_v11  ;;  %v1809_v45 = vsel %vm1777_vm4, %v1747_v12, %v1793_v23  ;;  %v1753_v48 = vadd.f32 %v1752_v33, %v3319_v37 }
 0x22f   : > { %v1754_v10 = vpop.f32.mrf.mxu1  ;;  %v1821_v53 = vpack.c.bf16 %v1809_v45, %v1807_v52 }
 0x230   : > { %v1755_v13 = vadd.f32 %v1754_v10, %v3315_v36  ;;  %v1810_v47 = vsel %vm1778_vm7, %v1749_v11, %v1794_v38  ;;  %v1795_v59 = vmul.f32 0.01, %v1753_v48  ;;  %vm1779_vm10 = vcmp.gt.f32.partialorder %v1753_v48, 0.0 }
 0x231   : > { %v1756_v49 = vpop.f32.mrf.mxu1  ;;  %v1822_v51 = vpack.c.bf16 %v1810_v47, %v1808_v46 }
 0x232   : > { %v1757_v2 = vadd.f32 %v1756_v49, %v3319_v37  ;;  %v1796_v17 = vmul.f32 0.01, %v1755_v13  ;;  %vm1780_vm9 = vcmp.gt.f32.partialorder %v1755_v13, 0.0  ;;  %v1811_v22 = vsel %vm1779_vm10, %v1753_v48, %v1795_v59 }
 0x233   : > { %v1758_v54 = vpop.f32.mrf.mxu1  ;;  %2002 = vmatprep.mubr.bf16.mxu0 %v1822_v51 }
 0x234   : > { %vm1781_vm8 = vcmp.gt.f32.partialorder %v1757_v2, 0.0  ;;  %v1797_v56 = vmul.f32 0.01, %v1757_v2  ;;  %v1759_v19 = vadd.f32 %v1758_v54, %v3315_v36  ;;  %2003 = vmatmul.mubr.bf16.gmra.mxu0 %v1821_v53  ;;  %v1812_v55 = vsel %vm1780_vm9, %v1755_v13, %v1796_v17 }
 0x235   : > { %v1762_v14 = vpop.f32.mrf.mxu1 }
 0x236   : > { %vm1782_vm11 = vcmp.gt.f32.partialorder %v1759_v19, 0.0  ;;  %v1798_v31 = vmul.f32 0.01, %v1759_v19  ;;  %v1813_v62 = vsel %vm1781_vm8, %v1757_v2, %v1797_v56  ;;  %v1763_v57 = vadd.f32 %v1762_v14, %v3319_v37 }
 0x237   : > { %v1764_v35 = vpop.f32.mrf.mxu1  ;;  %v1823_v29 = vpack.c.bf16 %v1813_v62, %v1811_v22 }
 0x238   : > { %v1765_v1 = vadd.f32 %v1764_v35, %v3315_v36  ;;  %v1814_v26 = vsel %vm1782_vm11, %v1759_v19, %v1798_v31  ;;  %v1799_v60 = vmul.f32 0.01, %v1763_v57  ;;  %vm1783_vm14 = vcmp.gt.f32.partialorder %v1763_v57, 0.0 }
 0x239   : > { %v1766_v5 = vpop.f32.mrf.mxu1  ;;  %v1824_v21 = vpack.c.bf16 %v1814_v26, %v1812_v55 }
 0x23a   : > { %v1767_v41 = vadd.f32 %v1766_v5, %v3319_v37  ;;  %v1800_v7 = vmul.f32 0.01, %v1765_v1  ;;  %vm1784_vm13 = vcmp.gt.f32.partialorder %v1765_v1, 0.0  ;;  %v1815_v37 = vsel %vm1783_vm14, %v1763_v57, %v1799_v60 }
 0x23b   : > { %v1768_v4 = vpop.f32.mrf.mxu1  ;;  %2010 = vmatprep.mubr.bf16.mxu0 %v1824_v21 }
 0x23c   : > { %vm1785_vm12 = vcmp.gt.f32.partialorder %v1767_v41, 0.0  ;;  %v1801_v3 = vmul.f32 0.01, %v1767_v41  ;;  %v1769_v6 = vadd.f32 %v1768_v4, %v3315_v36  ;;  %2011 = vmatmul.mubr.bf16.gmra.mxu0 %v1823_v29  ;;  %v1816_v9 = vsel %vm1784_vm13, %v1765_v1, %v1800_v7  ;;  %v2296_v36 = vld [vmem:[%s3363_s6] ss:$0 sm:$0xff] }
 0x23e   : > { %vm1786_vm15 = vcmp.gt.f32.partialorder %v1769_v6, 0.0  ;;  %v1802_v25 = vmul.f32 0.01, %v1769_v6  ;;  %v1817_v39 = vsel %vm1785_vm12, %v1767_v41, %v1801_v3 }
 0x23f   : > { %v1825_v8 = vpack.c.bf16 %v1817_v39, %v1815_v37 }
 0x240   : > { %v1818_v40 = vsel %vm1786_vm15, %v1769_v6, %v1802_v25 }
 0x241   : > { %v1826_v16 = vpack.c.bf16 %v1818_v40, %v1816_v9 }
 0x243   : > { %2018 = vmatprep.mubr.bf16.mxu0 %v1826_v16 }
 0x244   : > { %2019 = vmatmul.mubr.bf16.gmra.mxu0 %v1825_v8 }
 0x2ec   : > { %v2331_v28 = vpop.f32.mrf.mxu0 }
 0x2ee   : > { %v2332_v18 = vpop.f32.mrf.mxu0 }
 0x2ef   : > { %v2333_v24 = vadd.f32 %v2332_v18, %v2331_v28 }
 0x2f0   : > { %v2334_v27 = vpop.f32.mrf.mxu0 }
 0x2f1   : > { %v1997_v20 = vadd.f32 %v2333_v24, %v2296_v36 }
 0x2f2   : > { %v2335_v30 = vpop.f32.mrf.mxu0 }
 0x2f3   : > { %vm2027_vm0 = vcmp.gt.f32.partialorder %v1997_v20, 0.0  ;;  %v2035_v42 = vmul.f32 0.01, %v1997_v20  ;;  %v2336_v32 = vadd.f32 %v2335_v30, %v2334_v27 }
 0x2f4   : > { %v2337_v34 = vpop.f32.mrf.mxu0 }
 0x2f5   : > { %v2043_v58 = vsel %vm2027_vm0, %v1997_v20, %v2035_v42  ;;  %v2000_v61 = vadd.f32 %v2336_v32, %v2296_v36 }
 0x2f6   : > { %2051 = vst [vmem:[%s3344_s30] sm:$0xff] %v2043_v58  ;;  %v2338_v63 = vpop.f32.mrf.mxu0 }
 0x2f7   : > { %vm2028_vm1 = vcmp.gt.f32.partialorder %v2000_v61, 0.0  ;;  %v2036_v43 = vmul.f32 0.01, %v2000_v61  ;;  %v2339_v0 = vadd.f32 %v2338_v63, %v2337_v34 }
 0x2f8   : > { %v2340_v12 = vpop.f32.mrf.mxu0 }
 0x2f9   : > { %v2044_v50 = vsel %vm2028_vm1, %v2000_v61, %v2036_v43  ;;  %v2005_v15 = vadd.f32 %v2339_v0, %v2296_v36 }
 0x2fa   : > { %2052 = vst [vmem:[%s3344_s30 + $0x8] sm:$0xff] %v2044_v50  ;;  %v2341_v23 = vpop.f32.mrf.mxu0 }
 0x2fb   : > { %vm2029_vm2 = vcmp.gt.f32.partialorder %v2005_v15, 0.0  ;;  %v2037_v11 = vmul.f32 0.01, %v2005_v15  ;;  %v2342_v44 = vadd.f32 %v2341_v23, %v2340_v12 }
 0x2fc   : > { %v2343_v33 = vpop.f32.mrf.mxu0 }
 0x2fd   : > { %v2045_v38 = vsel %vm2029_vm2, %v2005_v15, %v2037_v11  ;;  %v2008_v10 = vadd.f32 %v2342_v44, %v2296_v36 }
 0x2fe   : > { %2053 = vst [vmem:[%s3344_s30 + $0x10] sm:$0xff] %v2045_v38  ;;  %v2344_v45 = vpop.f32.mrf.mxu0 }
 0x2ff   : > { %vm2030_vm3 = vcmp.gt.f32.partialorder %v2008_v10, 0.0  ;;  %v2038_v13 = vmul.f32 0.01, %v2008_v10  ;;  %v2345_v46 = vadd.f32 %v2344_v45, %v2343_v33 }
 0x300   : > { %v2346_v47 = vpop.f32.mrf.mxu0 }
 0x301   : > { %v2046_v48 = vsel %vm2030_vm3, %v2008_v10, %v2038_v13  ;;  %v2013_v49 = vadd.f32 %v2345_v46, %v2296_v36 }
 0x302   : > { %2054 = vst [vmem:[%s3344_s30 + $0x18] sm:$0xff] %v2046_v48  ;;  %v2347_v51 = vpop.f32.mrf.mxu0 }
 0x303   : > { %vm2031_vm4 = vcmp.gt.f32.partialorder %v2013_v49, 0.0  ;;  %v2039_v52 = vmul.f32 0.01, %v2013_v49  ;;  %v2348_v2 = vadd.f32 %v2347_v51, %v2346_v47 }
 0x304   : > { %v2349_v53 = vpop.f32.mrf.mxu0 }
 0x305   : > { %v2047_v54 = vsel %vm2031_vm4, %v2013_v49, %v2039_v52  ;;  %v2016_v17 = vadd.f32 %v2348_v2, %v2296_v36 }
 0x306   : > { %2055 = vst [vmem:[%s3344_s30 + $0x20] sm:$0xff] %v2047_v54  ;;  %v2350_v56 = vpop.f32.mrf.mxu0 }
 0x307   : > { %vm2032_vm5 = vcmp.gt.f32.partialorder %v2016_v17, 0.0  ;;  %v2040_v19 = vmul.f32 0.01, %v2016_v17  ;;  %v2351_v59 = vadd.f32 %v2350_v56, %v2349_v53 }
 0x308   : > { %v2352_v14 = vpop.f32.mrf.mxu0 }
 0x309   : > { %v2048_v31 = vsel %vm2032_vm5, %v2016_v17, %v2040_v19  ;;  %v2021_v35 = vadd.f32 %v2351_v59, %v2296_v36 }
 0x30a   : > { %2056 = vst [vmem:[%s3344_s30 + $0x28] sm:$0xff] %v2048_v31  ;;  %v2353_v62 = vpop.f32.mrf.mxu0 }
 0x30b   : > { %vm2033_vm6 = vcmp.gt.f32.partialorder %v2021_v35, 0.0  ;;  %v2041_v1 = vmul.f32 0.01, %v2021_v35  ;;  %v2354_v55 = vadd.f32 %v2353_v62, %v2352_v14 }
 0x30d   : > { %v2049_v26 = vsel %vm2033_vm6, %v2021_v35, %v2041_v1  ;;  %v2024_v57 = vadd.f32 %v2354_v55, %v2296_v36 }
 0x30e   : > { %2057 = vst [vmem:[%s3344_s30 + $0x30] sm:$0xff] %v2049_v26 }
 0x30f   : > { %vm2034_vm7 = vcmp.gt.f32.partialorder %v2024_v57, 0.0  ;;  %v2042_v5 = vmul.f32 0.01, %v2024_v57 }
 0x311   : > { %v2050_v21 = vsel %vm2034_vm7, %v2024_v57, %v2042_v5 }
 0x312   : > { %2058 = vst [vmem:[%s3344_s30 + $0x38] sm:$0xff] %v2050_v21 }
 0x313 PF: > { %s17_s24 = sadd.s32 1, %s2643_s24  }
 0x314   : > { %p14_p4 = scmp.ge.s32.totalorder %s17_s24, 6  }
 0x316   :  { %16 = sbr.rel (!%p14_p4) target bundleno = 1 (0x1), region = 78 }

</bundles_post_ra>
